<compile_context>
chip_gen: v7x
topology: tpu7x:2x2x1
jax: 0.10.0
libtpu: 0.0.40
codegen_flags: <defaults>
</compile_context>

<pallas_src>
import functools
import math

import jax
import jax.numpy as jnp
from jax.experimental import pallas as pl
from jax.experimental.pallas import tpu as pltpu

LN_EPS = 1e-5


def _layernorm_f32(y, g, b):
    mean = jnp.mean(y, axis=-1, keepdims=True)
    cent = y - mean
    var = jnp.mean(cent * cent, axis=-1, keepdims=True)
    return cent * jax.lax.rsqrt(var + LN_EPS) * g + b


# ---------------------------------------------------------------------------
# Fully fused encoder kernel, one grid step per batch element.
# ---------------------------------------------------------------------------
def _encoder_kernel(x1_ref, x2_ref, wq_ref, wk_ref, wv_ref, wo_ref,
                    g1_ref, b1_ref, w1_ref, w2_ref, g2_ref, b2_ref,
                    out_ref, attn_ref=None, *, num_head, hidden_dim, scale):
    H, Dh = num_head, hidden_dim
    cdt = x1_ref.dtype            # MXU operand dtype = input dtype (bf16-friendly)

    x1 = x1_ref[...]              # (S1, D)
    x2 = x2_ref[...]              # (S2, D)

    # All-head projections as single wide matmuls; fold 1/sqrt(D) into q.
    q = jnp.dot(x1, wq_ref[...], preferred_element_type=jnp.float32) * scale
    k = jnp.dot(x2, wk_ref[...], preferred_element_type=jnp.float32)
    v = jnp.dot(x2, wv_ref[...], preferred_element_type=jnp.float32)
    q = q.astype(cdt)
    k = k.astype(cdt)
    v = v.astype(cdt)

    # Per-head scaled-dot-product attention (H is small and static).
    ctx_heads = []
    for h in range(H):
        qh = q[:, h * Dh:(h + 1) * Dh]                 # (S1, Dh)
        kh = k[:, h * Dh:(h + 1) * Dh]                 # (S2, Dh)
        vh = v[:, h * Dh:(h + 1) * Dh]                 # (S2, Dh)
        # scores = qh @ kh^T (contract Dh directly, no explicit transpose)
        s = jax.lax.dot_general(qh, kh, (((1,), (1,)), ((), ())),
                                preferred_element_type=jnp.float32)
        m = jnp.max(s, axis=-1, keepdims=True)
        e = jnp.exp(s - m)
        den = jnp.sum(e, axis=-1, keepdims=True)
        p = e * pl.reciprocal(den, approx=False)       # exact; EUP reciprocal
        if attn_ref is not None:
            attn_ref[h, :, :] = p.astype(attn_ref.dtype)
        ctx_heads.append(jnp.dot(p.astype(cdt), vh,
                                 preferred_element_type=jnp.float32))

    # Head-concat layout directly: (S1, H*Dh), columns ordered [head, dim].
    ctx = jnp.concatenate(ctx_heads, axis=-1).astype(cdt)

    # Output projection + residual + LayerNorm1.
    a = jnp.dot(ctx, wo_ref[...], preferred_element_type=jnp.float32)
    y1 = _layernorm_f32(a + x1.astype(jnp.float32),
                        g1_ref[...].astype(jnp.float32),
                        b1_ref[...].astype(jnp.float32))

    # FFN (Linear -> ReLU -> Linear) + residual + LayerNorm2.
    hdn = jnp.maximum(
        jnp.dot(y1.astype(cdt), w1_ref[...], preferred_element_type=jnp.float32),
        0.0)
    y2 = jnp.dot(hdn.astype(cdt), w2_ref[...],
                 preferred_element_type=jnp.float32) + y1
    out = _layernorm_f32(y2,
                         g2_ref[...].astype(jnp.float32),
                         b2_ref[...].astype(jnp.float32))
    out_ref[...] = out.astype(out_ref.dtype)


def cross_attention_encoder(seq1, seq2, params, *, num_head, hidden_dim,
                            return_attention=True):
    """seq1: [B, S1, D], seq2: [B, S2, D]; params hold torch-layout weights."""
    B, S1, D = seq1.shape
    _, S2, _ = seq2.shape
    H, Dh = num_head, hidden_dim
    HDh = H * Dh
    F = params["w1"].shape[0]
    scale = 1.0 / math.sqrt(D)   # module uses sqrt(input_dim), NOT sqrt(hidden_dim)

    # Torch nn.Linear weights are (out, in): y = x @ W^T.  Lay projections out
    # as (D, H*Dh) so one wide matmul projects all heads; head h is columns
    # [h*Dh : (h+1)*Dh] (matches the .view(batch,-1,H,Dh) ordering).
    wq = params["wq"].T          # (D, H*Dh)
    wk = params["wk"].T          # (D, H*Dh)
    wv = params["wv"].T          # (D, H*Dh)
    wo = params["wo"].T          # (H*Dh, D)
    w1 = params["w1"].T          # (D, F)
    w2 = params["w2"].T          # (F, D)
    g1 = params["g1"].reshape(1, D)
    b1 = params["b1"].reshape(1, D)
    g2 = params["g2"].reshape(1, D)
    b2 = params["b2"].reshape(1, D)

    # VMEM budget: resident (single-buffered) weights + double-buffered per-batch
    # I/O tiles + f32 intermediates, with 2x headroom; clamp to 48 MiB so the
    # request stays safe on v7x (64 MiB physical) while leaving compiler scratch.
    in_isz = jnp.dtype(seq1.dtype).itemsize
    w_isz = jnp.dtype(params["wq"].dtype).itemsize
    w_bytes = (4 * D * HDh + D * F + F * D + 4 * D) * w_isz
    io_bytes = 2 * ((S1 + S2) * D + S1 * D + H * S1 * S2) * in_isz
    tmp_bytes = 4 * ((S1 + 2 * S2) * HDh + H * S1 * S2 + S1 * (HDh + 2 * D + F))
    est = w_bytes + io_bytes + tmp_bytes
    vmem_limit = int(min(max(2 * est, 16 * 1024 * 1024), 48 * 1024 * 1024))

    def wspec(shp):
        # Constant index_map -> resident weights; single buffer (no double-buffer).
        return pl.BlockSpec(shp, lambda b: (0,) * len(shp),
                            pipeline_mode=pl.Buffered(1))

    out_shapes = [jax.ShapeDtypeStruct((B, S1, D), seq1.dtype)]
    out_specs = [pl.BlockSpec((None, S1, D), lambda b: (b, 0, 0))]
    if return_attention:
        out_shapes.append(jax.ShapeDtypeStruct((B, H, S1, S2), seq1.dtype))
        out_specs.append(pl.BlockSpec((None, H, S1, S2), lambda b: (b, 0, 0, 0)))

    results = pl.pallas_call(
        functools.partial(_encoder_kernel, num_head=H, hidden_dim=Dh,
                          scale=scale),
        out_shape=tuple(out_shapes),
        grid_spec=pltpu.PrefetchScalarGridSpec(
            num_scalar_prefetch=0,
            grid=(B,),
            in_specs=[
                pl.BlockSpec((None, S1, D), lambda b: (b, 0, 0)),   # seq1
                pl.BlockSpec((None, S2, D), lambda b: (b, 0, 0)),   # seq2
                wspec((D, HDh)),                                    # Wq (all heads)
                wspec((D, HDh)),                                    # Wk
                wspec((D, HDh)),                                    # Wv
                wspec((HDh, D)),                                    # Wo^T
                wspec((1, D)), wspec((1, D)),                       # LN1 gamma/beta
                wspec((D, F)),                                      # W1^T
                wspec((F, D)),                                      # W2^T
                wspec((1, D)), wspec((1, D)),                       # LN2 gamma/beta
            ],
            out_specs=out_specs,
        ),
        compiler_params=pltpu.CompilerParams(
            dimension_semantics=("parallel",),       # B steps split across TCs
            vmem_limit_bytes=vmem_limit),
    )(seq1, seq2, wq, wk, wv, wo, g1, b1, w1, w2, g2, b2)

    if return_attention:
        return results[0], results[1]
    return results[0], None


def reference(seq1, seq2, p, num_head, hidden_dim):
    B, S1, D = seq1.shape
    H, Dh = num_head, hidden_dim
    scale = 1.0 / math.sqrt(D)

    def ln(x, g, b):
        mean = jnp.mean(x, axis=-1, keepdims=True)
        var = jnp.mean((x - mean) ** 2, axis=-1, keepdims=True)
        return (x - mean) / jnp.sqrt(var + LN_EPS) * g + b

    q = (seq1 @ p["wq"].T).reshape(B, S1, H, Dh).transpose(0, 2, 1, 3)
    k = (seq2 @ p["wk"].T).reshape(B, -1, H, Dh).transpose(0, 2, 1, 3)
    v = (seq2 @ p["wv"].T).reshape(B, -1, H, Dh).transpose(0, 2, 1, 3)
    s = jnp.einsum("bhqd,bhkd->bhqk", q, k) * scale
    attn = jax.nn.softmax(s, axis=-1)
    ctx = jnp.einsum("bhqk,bhkd->bhqd", attn, v)
    ctx = ctx.transpose(0, 2, 1, 3).reshape(B, S1, H * Dh)
    y1 = ln(ctx @ p["wo"].T + seq1, p["g1"], p["b1"])
    h = jnp.maximum(y1 @ p["w1"].T, 0.0)
    y2 = ln(h @ p["w2"].T + y1, p["g2"], p["b2"])
    return y2, attn


if __name__ == "__main__":
    B, S1, S2 = 2, 8, 8
    input_dim, hidden_dim, output_dim, num_head = 32, 16, 64, 4

    key = jax.random.PRNGKey(0)
    ks = jax.random.split(key, 8)
    seq1 = jax.random.normal(ks[0], (B, S1, input_dim), dtype=jnp.float32)
    seq2 = jax.random.normal(ks[1], (B, S2, input_dim), dtype=jnp.float32)
    params = {
        # nn.Linear(input_dim, hidden_dim*num_head, bias=False).weight
        "wq": jax.random.normal(ks[2], (num_head * hidden_dim, input_dim), jnp.float32) * 0.1,
        "wk": jax.random.normal(ks[3], (num_head * hidden_dim, input_dim), jnp.float32) * 0.1,
        "wv": jax.random.normal(ks[4], (num_head * hidden_dim, input_dim), jnp.float32) * 0.1,
        # nn.Linear(num_head*hidden_dim, input_dim, bias=False).weight
        "wo": jax.random.normal(ks[5], (input_dim, num_head * hidden_dim), jnp.float32) * 0.1,
        # nn.LayerNorm(input_dim) default init
        "g1": jnp.ones((input_dim,), jnp.float32),
        "b1": jnp.zeros((input_dim,), jnp.float32),
        # FFN: Linear(input_dim, output_dim) / Linear(output_dim, input_dim)
        "w1": jax.random.normal(ks[6], (output_dim, input_dim), jnp.float32) * 0.1,
        "w2": jax.random.normal(ks[7], (input_dim, output_dim), jnp.float32) * 0.1,
        "g2": jnp.ones((input_dim,), jnp.float32),
        "b2": jnp.zeros((input_dim,), jnp.float32),
    }

    out, attn = cross_attention_encoder(
        seq1, seq2, params, num_head=num_head, hidden_dim=hidden_dim)
    out, attn = jax.block_until_ready((out, attn))

    ref_out, ref_attn = reference(seq1, seq2, params, num_head, hidden_dim)
    assert out.shape == (B, S1, input_dim)
    assert attn.shape == (B, num_head, S1, S2)
    assert jnp.allclose(attn, ref_attn, atol=5e-5, rtol=5e-5), "attention mismatch"
    assert jnp.allclose(out, ref_out, atol=5e-5, rtol=5e-5), "output mismatch"

    print("KERNEL_OK")
</pallas_src>

<mosaic_0001>
module attributes {stable_mosaic.version = 11 : i64} {
  func.func @_encoder_kernel(%arg0: i32, %arg1: memref<1x8x32xf32, #tpu.memory_space<vmem>>, %arg2: memref<1x8x32xf32, #tpu.memory_space<vmem>>, %arg3: memref<32x64xf32, #tpu.memory_space<vmem>>, %arg4: memref<32x64xf32, #tpu.memory_space<vmem>>, %arg5: memref<32x64xf32, #tpu.memory_space<vmem>>, %arg6: memref<64x32xf32, #tpu.memory_space<vmem>>, %arg7: memref<1x32xf32, #tpu.memory_space<vmem>>, %arg8: memref<1x32xf32, #tpu.memory_space<vmem>>, %arg9: memref<32x64xf32, #tpu.memory_space<vmem>>, %arg10: memref<64x32xf32, #tpu.memory_space<vmem>>, %arg11: memref<1x32xf32, #tpu.memory_space<vmem>>, %arg12: memref<1x32xf32, #tpu.memory_space<vmem>>, %arg13: memref<1x8x32xf32, #tpu.memory_space<vmem>>, %arg14: memref<1x4x8x8xf32, #tpu.memory_space<vmem>>) attributes {dimension_semantics = [#tpu.dimension_semantics<parallel>], iteration_bounds = array<i64: 2>, scalar_prefetch = 0 : i64, scratch_operands = 0 : i64, tpu.core_type = #tpu.core_type<tc>, window_params = [{transform_indices = @transform_0, window_bounds = array<i64: 1, 8, 32>}, {transform_indices = @transform_1, window_bounds = array<i64: 1, 8, 32>}, {pipeline_mode = #tpu.pipeline_mode<synchronous>, transform_indices = @transform_2, window_bounds = array<i64: 32, 64>}, {pipeline_mode = #tpu.pipeline_mode<synchronous>, transform_indices = @transform_3, window_bounds = array<i64: 32, 64>}, {pipeline_mode = #tpu.pipeline_mode<synchronous>, transform_indices = @transform_4, window_bounds = array<i64: 32, 64>}, {pipeline_mode = #tpu.pipeline_mode<synchronous>, transform_indices = @transform_5, window_bounds = array<i64: 64, 32>}, {pipeline_mode = #tpu.pipeline_mode<synchronous>, transform_indices = @transform_6, window_bounds = array<i64: 1, 32>}, {pipeline_mode = #tpu.pipeline_mode<synchronous>, transform_indices = @transform_7, window_bounds = array<i64: 1, 32>}, {pipeline_mode = #tpu.pipeline_mode<synchronous>, transform_indices = @transform_8, window_bounds = array<i64: 32, 64>}, {pipeline_mode = #tpu.pipeline_mode<synchronous>, transform_indices = @transform_9, window_bounds = array<i64: 64, 32>}, {pipeline_mode = #tpu.pipeline_mode<synchronous>, transform_indices = @transform_10, window_bounds = array<i64: 1, 32>}, {pipeline_mode = #tpu.pipeline_mode<synchronous>, transform_indices = @transform_11, window_bounds = array<i64: 1, 32>}, {transform_indices = @transform_12, window_bounds = array<i64: 1, 8, 32>}, {transform_indices = @transform_13, window_bounds = array<i64: 1, 4, 8, 8>}]} {
    %c0 = arith.constant 0 : index
    %c0_0 = arith.constant 0 : index
    %c0_1 = arith.constant 0 : index
    %0 = vector.load %arg1[%c0, %c0_0, %c0_1] : memref<1x8x32xf32, #tpu.memory_space<vmem>>, vector<1x8x32xf32>
    %1 = vector.shape_cast %0 : vector<1x8x32xf32> to vector<8x32xf32>
    %c0_2 = arith.constant 0 : index
    %c0_3 = arith.constant 0 : index
    %c0_4 = arith.constant 0 : index
    %2 = vector.load %arg2[%c0_2, %c0_3, %c0_4] : memref<1x8x32xf32, #tpu.memory_space<vmem>>, vector<1x8x32xf32>
    %3 = vector.shape_cast %2 : vector<1x8x32xf32> to vector<8x32xf32>
    %c0_5 = arith.constant 0 : index
    %c0_6 = arith.constant 0 : index
    %4 = vector.load %arg3[%c0_5, %c0_6] : memref<32x64xf32, #tpu.memory_space<vmem>>, vector<32x64xf32>
    %cst = arith.constant dense<0.000000e+00> : vector<8x64xf32>
    %5 = tpu.matmul %1, %4, %cst {dimension_numbers = #tpu.dot_dimension_numbers<[1], [0], [0], [1], [0, 0, 1, 1], [], []>} : vector<8x32xf32>, vector<32x64xf32>, vector<8x64xf32> -> vector<8x64xf32>
    %cst_7 = arith.constant 0.176776692 : f32
    %6 = vector.broadcast %cst_7 : f32 to vector<8x64xf32>
    %7 = arith.mulf %5, %6 : vector<8x64xf32>
    %c0_8 = arith.constant 0 : index
    %c0_9 = arith.constant 0 : index
    %8 = vector.load %arg4[%c0_8, %c0_9] : memref<32x64xf32, #tpu.memory_space<vmem>>, vector<32x64xf32>
    %cst_10 = arith.constant dense<0.000000e+00> : vector<8x64xf32>
    %9 = tpu.matmul %3, %8, %cst_10 {dimension_numbers = #tpu.dot_dimension_numbers<[1], [0], [0], [1], [0, 0, 1, 1], [], []>} : vector<8x32xf32>, vector<32x64xf32>, vector<8x64xf32> -> vector<8x64xf32>
    %c0_11 = arith.constant 0 : index
    %c0_12 = arith.constant 0 : index
    %10 = vector.load %arg5[%c0_11, %c0_12] : memref<32x64xf32, #tpu.memory_space<vmem>>, vector<32x64xf32>
    %cst_13 = arith.constant dense<0.000000e+00> : vector<8x64xf32>
    %11 = tpu.matmul %3, %10, %cst_13 {dimension_numbers = #tpu.dot_dimension_numbers<[1], [0], [0], [1], [0, 0, 1, 1], [], []>} : vector<8x32xf32>, vector<32x64xf32>, vector<8x64xf32> -> vector<8x64xf32>
    %12 = vector.extract_strided_slice %7 {offsets = [0, 0], sizes = [8, 16], strides = [1, 1]} : vector<8x64xf32> to vector<8x16xf32>
    %13 = vector.extract_strided_slice %9 {offsets = [0, 0], sizes = [8, 16], strides = [1, 1]} : vector<8x64xf32> to vector<8x16xf32>
    %14 = vector.extract_strided_slice %11 {offsets = [0, 0], sizes = [8, 16], strides = [1, 1]} : vector<8x64xf32> to vector<8x16xf32>
    %cst_14 = arith.constant dense<0.000000e+00> : vector<8x8xf32>
    %15 = tpu.matmul %12, %13, %cst_14 {dimension_numbers = #tpu.dot_dimension_numbers<[1], [1], [0], [0], [0, 0, 1, 0], [], []>} : vector<8x16xf32>, vector<8x16xf32>, vector<8x8xf32> -> vector<8x8xf32>
    %cst_15 = arith.constant dense<0xFF800000> : vector<8xf32>
    %16 = vector.multi_reduction <maximumf>, %15, %cst_15 [1] : vector<8x8xf32> to vector<8xf32>
    %17 = vector.shape_cast %16 : vector<8xf32> to vector<8x1xf32>
    %18 = vector.broadcast %17 : vector<8x1xf32> to vector<8x8xf32>
    %19 = arith.subf %15, %18 : vector<8x8xf32>
    %20 = math.exp %19 : vector<8x8xf32>
    %cst_16 = arith.constant dense<0.000000e+00> : vector<8xf32>
    %21 = vector.multi_reduction <add>, %20, %cst_16 [1] : vector<8x8xf32> to vector<8xf32>
    %22 = vector.shape_cast %21 : vector<8xf32> to vector<8x1xf32>
    %23 = tpu.reciprocal %22 : vector<8x1xf32> -> vector<8x1xf32>
    %24 = vector.broadcast %23 : vector<8x1xf32> to vector<8x8xf32>
    %25 = arith.mulf %20, %24 : vector<8x8xf32>
    %c0_17 = arith.constant 0 : index
    %c0_18 = arith.constant 0 : index
    %c0_19 = arith.constant 0 : index
    %c0_20 = arith.constant 0 : index
    %26 = vector.load %arg14[%c0_17, %c0_18, %c0_19, %c0_20] : memref<1x4x8x8xf32, #tpu.memory_space<vmem>>, vector<1x1x8x8xf32>
    %27 = vector.shape_cast %26 : vector<1x1x8x8xf32> to vector<8x8xf32>
    %28 = vector.shape_cast %25 : vector<8x8xf32> to vector<1x1x8x8xf32>
    tpu.vector_store %arg14[%c0_17, %c0_18, %c0_19, %c0_20], %28 {strides = array<i32>} : memref<1x4x8x8xf32, #tpu.memory_space<vmem>>, vector<1x1x8x8xf32>,
    %cst_21 = arith.constant dense<0.000000e+00> : vector<8x16xf32>
    %29 = tpu.matmul %25, %14, %cst_21 {dimension_numbers = #tpu.dot_dimension_numbers<[1], [0], [0], [1], [0, 0, 1, 1], [], []>} : vector<8x8xf32>, vector<8x16xf32>, vector<8x16xf32> -> vector<8x16xf32>
    %30 = vector.extract_strided_slice %7 {offsets = [0, 16], sizes = [8, 16], strides = [1, 1]} : vector<8x64xf32> to vector<8x16xf32>
    %31 = vector.extract_strided_slice %9 {offsets = [0, 16], sizes = [8, 16], strides = [1, 1]} : vector<8x64xf32> to vector<8x16xf32>
    %32 = vector.extract_strided_slice %11 {offsets = [0, 16], sizes = [8, 16], strides = [1, 1]} : vector<8x64xf32> to vector<8x16xf32>
    %cst_22 = arith.constant dense<0.000000e+00> : vector<8x8xf32>
    %33 = tpu.matmul %30, %31, %cst_22 {dimension_numbers = #tpu.dot_dimension_numbers<[1], [1], [0], [0], [0, 0, 1, 0], [], []>} : vector<8x16xf32>, vector<8x16xf32>, vector<8x8xf32> -> vector<8x8xf32>
    %cst_23 = arith.constant dense<0xFF800000> : vector<8xf32>
    %34 = vector.multi_reduction <maximumf>, %33, %cst_23 [1] : vector<8x8xf32> to vector<8xf32>
    %35 = vector.shape_cast %34 : vector<8xf32> to vector<8x1xf32>
    %36 = vector.broadcast %35 : vector<8x1xf32> to vector<8x8xf32>
    %37 = arith.subf %33, %36 : vector<8x8xf32>
    %38 = math.exp %37 : vector<8x8xf32>
    %cst_24 = arith.constant dense<0.000000e+00> : vector<8xf32>
    %39 = vector.multi_reduction <add>, %38, %cst_24 [1] : vector<8x8xf32> to vector<8xf32>
    %40 = vector.shape_cast %39 : vector<8xf32> to vector<8x1xf32>
    %41 = tpu.reciprocal %40 : vector<8x1xf32> -> vector<8x1xf32>
    %42 = vector.broadcast %41 : vector<8x1xf32> to vector<8x8xf32>
    %43 = arith.mulf %38, %42 : vector<8x8xf32>
    %c0_25 = arith.constant 0 : index
    %c1 = arith.constant 1 : index
    %c0_26 = arith.constant 0 : index
    %c0_27 = arith.constant 0 : index
    %44 = vector.load %arg14[%c0_25, %c1, %c0_26, %c0_27] : memref<1x4x8x8xf32, #tpu.memory_space<vmem>>, vector<1x1x8x8xf32>
    %45 = vector.shape_cast %44 : vector<1x1x8x8xf32> to vector<8x8xf32>
    %46 = vector.shape_cast %43 : vector<8x8xf32> to vector<1x1x8x8xf32>
    tpu.vector_store %arg14[%c0_25, %c1, %c0_26, %c0_27], %46 {strides = array<i32>} : memref<1x4x8x8xf32, #tpu.memory_space<vmem>>, vector<1x1x8x8xf32>,
    %cst_28 = arith.constant dense<0.000000e+00> : vector<8x16xf32>
    %47 = tpu.matmul %43, %32, %cst_28 {dimension_numbers = #tpu.dot_dimension_numbers<[1], [0], [0], [1], [0, 0, 1, 1], [], []>} : vector<8x8xf32>, vector<8x16xf32>, vector<8x16xf32> -> vector<8x16xf32>
    %48 = vector.extract_strided_slice %7 {offsets = [0, 32], sizes = [8, 16], strides = [1, 1]} : vector<8x64xf32> to vector<8x16xf32>
    %49 = vector.extract_strided_slice %9 {offsets = [0, 32], sizes = [8, 16], strides = [1, 1]} : vector<8x64xf32> to vector<8x16xf32>
    %50 = vector.extract_strided_slice %11 {offsets = [0, 32], sizes = [8, 16], strides = [1, 1]} : vector<8x64xf32> to vector<8x16xf32>
    %cst_29 = arith.constant dense<0.000000e+00> : vector<8x8xf32>
    %51 = tpu.matmul %48, %49, %cst_29 {dimension_numbers = #tpu.dot_dimension_numbers<[1], [1], [0], [0], [0, 0, 1, 0], [], []>} : vector<8x16xf32>, vector<8x16xf32>, vector<8x8xf32> -> vector<8x8xf32>
    %cst_30 = arith.constant dense<0xFF800000> : vector<8xf32>
    %52 = vector.multi_reduction <maximumf>, %51, %cst_30 [1] : vector<8x8xf32> to vector<8xf32>
    %53 = vector.shape_cast %52 : vector<8xf32> to vector<8x1xf32>
    %54 = vector.broadcast %53 : vector<8x1xf32> to vector<8x8xf32>
    %55 = arith.subf %51, %54 : vector<8x8xf32>
    %56 = math.exp %55 : vector<8x8xf32>
    %cst_31 = arith.constant dense<0.000000e+00> : vector<8xf32>
    %57 = vector.multi_reduction <add>, %56, %cst_31 [1] : vector<8x8xf32> to vector<8xf32>
    %58 = vector.shape_cast %57 : vector<8xf32> to vector<8x1xf32>
    %59 = tpu.reciprocal %58 : vector<8x1xf32> -> vector<8x1xf32>
    %60 = vector.broadcast %59 : vector<8x1xf32> to vector<8x8xf32>
    %61 = arith.mulf %56, %60 : vector<8x8xf32>
    %c0_32 = arith.constant 0 : index
    %c2 = arith.constant 2 : index
    %c0_33 = arith.constant 0 : index
    %c0_34 = arith.constant 0 : index
    %62 = vector.load %arg14[%c0_32, %c2, %c0_33, %c0_34] : memref<1x4x8x8xf32, #tpu.memory_space<vmem>>, vector<1x1x8x8xf32>
    %63 = vector.shape_cast %62 : vector<1x1x8x8xf32> to vector<8x8xf32>
    %64 = vector.shape_cast %61 : vector<8x8xf32> to vector<1x1x8x8xf32>
    tpu.vector_store %arg14[%c0_32, %c2, %c0_33, %c0_34], %64 {strides = array<i32>} : memref<1x4x8x8xf32, #tpu.memory_space<vmem>>, vector<1x1x8x8xf32>,
    %cst_35 = arith.constant dense<0.000000e+00> : vector<8x16xf32>
    %65 = tpu.matmul %61, %50, %cst_35 {dimension_numbers = #tpu.dot_dimension_numbers<[1], [0], [0], [1], [0, 0, 1, 1], [], []>} : vector<8x8xf32>, vector<8x16xf32>, vector<8x16xf32> -> vector<8x16xf32>
    %66 = vector.extract_strided_slice %7 {offsets = [0, 48], sizes = [8, 16], strides = [1, 1]} : vector<8x64xf32> to vector<8x16xf32>
    %67 = vector.extract_strided_slice %9 {offsets = [0, 48], sizes = [8, 16], strides = [1, 1]} : vector<8x64xf32> to vector<8x16xf32>
    %68 = vector.extract_strided_slice %11 {offsets = [0, 48], sizes = [8, 16], strides = [1, 1]} : vector<8x64xf32> to vector<8x16xf32>
    %cst_36 = arith.constant dense<0.000000e+00> : vector<8x8xf32>
    %69 = tpu.matmul %66, %67, %cst_36 {dimension_numbers = #tpu.dot_dimension_numbers<[1], [1], [0], [0], [0, 0, 1, 0], [], []>} : vector<8x16xf32>, vector<8x16xf32>, vector<8x8xf32> -> vector<8x8xf32>
    %cst_37 = arith.constant dense<0xFF800000> : vector<8xf32>
    %70 = vector.multi_reduction <maximumf>, %69, %cst_37 [1] : vector<8x8xf32> to vector<8xf32>
    %71 = vector.shape_cast %70 : vector<8xf32> to vector<8x1xf32>
    %72 = vector.broadcast %71 : vector<8x1xf32> to vector<8x8xf32>
    %73 = arith.subf %69, %72 : vector<8x8xf32>
    %74 = math.exp %73 : vector<8x8xf32>
    %cst_38 = arith.constant dense<0.000000e+00> : vector<8xf32>
    %75 = vector.multi_reduction <add>, %74, %cst_38 [1] : vector<8x8xf32> to vector<8xf32>
    %76 = vector.shape_cast %75 : vector<8xf32> to vector<8x1xf32>
    %77 = tpu.reciprocal %76 : vector<8x1xf32> -> vector<8x1xf32>
    %78 = vector.broadcast %77 : vector<8x1xf32> to vector<8x8xf32>
    %79 = arith.mulf %74, %78 : vector<8x8xf32>
    %c0_39 = arith.constant 0 : index
    %c3 = arith.constant 3 : index
    %c0_40 = arith.constant 0 : index
    %c0_41 = arith.constant 0 : index
    %80 = vector.load %arg14[%c0_39, %c3, %c0_40, %c0_41] : memref<1x4x8x8xf32, #tpu.memory_space<vmem>>, vector<1x1x8x8xf32>
    %81 = vector.shape_cast %80 : vector<1x1x8x8xf32> to vector<8x8xf32>
    %82 = vector.shape_cast %79 : vector<8x8xf32> to vector<1x1x8x8xf32>
    tpu.vector_store %arg14[%c0_39, %c3, %c0_40, %c0_41], %82 {strides = array<i32>} : memref<1x4x8x8xf32, #tpu.memory_space<vmem>>, vector<1x1x8x8xf32>,
    %cst_42 = arith.constant dense<0.000000e+00> : vector<8x16xf32>
    %83 = tpu.matmul %79, %68, %cst_42 {dimension_numbers = #tpu.dot_dimension_numbers<[1], [0], [0], [1], [0, 0, 1, 1], [], []>} : vector<8x8xf32>, vector<8x16xf32>, vector<8x16xf32> -> vector<8x16xf32>
    %84 = tpu.concatenate %29, %47, %65, %83 in 1 : vector<8x16xf32>, vector<8x16xf32>, vector<8x16xf32>, vector<8x16xf32> -> vector<8x64xf32>
    %c0_43 = arith.constant 0 : index
    %c0_44 = arith.constant 0 : index
    %85 = vector.load %arg6[%c0_43, %c0_44] : memref<64x32xf32, #tpu.memory_space<vmem>>, vector<64x32xf32>
    %cst_45 = arith.constant dense<0.000000e+00> : vector<8x32xf32>
    %86 = tpu.matmul %84, %85, %cst_45 {dimension_numbers = #tpu.dot_dimension_numbers<[1], [0], [0], [1], [0, 0, 1, 1], [], []>} : vector<8x64xf32>, vector<64x32xf32>, vector<8x32xf32> -> vector<8x32xf32>
    %87 = arith.addf %86, %1 : vector<8x32xf32>
    %c0_46 = arith.constant 0 : index
    %c0_47 = arith.constant 0 : index
    %88 = vector.load %arg7[%c0_46, %c0_47] : memref<1x32xf32, #tpu.memory_space<vmem>>, vector<1x32xf32>
    %c0_48 = arith.constant 0 : index
    %c0_49 = arith.constant 0 : index
    %89 = vector.load %arg8[%c0_48, %c0_49] : memref<1x32xf32, #tpu.memory_space<vmem>>, vector<1x32xf32>
    %cst_50 = arith.constant dense<0.000000e+00> : vector<8xf32>
    %90 = vector.multi_reduction <add>, %87, %cst_50 [1] : vector<8x32xf32> to vector<8xf32>
    %91 = vector.shape_cast %90 : vector<8xf32> to vector<8x1xf32>
    %cst_51 = arith.constant 3.200000e+01 : f32
    %92 = vector.broadcast %cst_51 : f32 to vector<8x1xf32>
    %93 = arith.divf %91, %92 : vector<8x1xf32>
    %94 = vector.broadcast %93 : vector<8x1xf32> to vector<8x32xf32>
    %95 = arith.subf %87, %94 : vector<8x32xf32>
    %96 = arith.mulf %95, %95 : vector<8x32xf32>
    %cst_52 = arith.constant dense<0.000000e+00> : vector<8xf32>
    %97 = vector.multi_reduction <add>, %96, %cst_52 [1] : vector<8x32xf32> to vector<8xf32>
    %98 = vector.shape_cast %97 : vector<8xf32> to vector<8x1xf32>
    %cst_53 = arith.constant 3.200000e+01 : f32
    %99 = vector.broadcast %cst_53 : f32 to vector<8x1xf32>
    %100 = arith.divf %98, %99 : vector<8x1xf32>
    %cst_54 = arith.constant 9.99999974E-6 : f32
    %101 = vector.broadcast %cst_54 : f32 to vector<8x1xf32>
    %102 = arith.addf %100, %101 : vector<8x1xf32>
    %103 = math.rsqrt %102 : vector<8x1xf32>
    %104 = vector.broadcast %103 : vector<8x1xf32> to vector<8x32xf32>
    %105 = arith.mulf %95, %104 : vector<8x32xf32>
    %106 = vector.broadcast %88 : vector<1x32xf32> to vector<8x32xf32>
    %107 = arith.mulf %105, %106 : vector<8x32xf32>
    %108 = vector.broadcast %89 : vector<1x32xf32> to vector<8x32xf32>
    %109 = arith.addf %107, %108 : vector<8x32xf32>
    %c0_55 = arith.constant 0 : index
    %c0_56 = arith.constant 0 : index
    %110 = vector.load %arg9[%c0_55, %c0_56] : memref<32x64xf32, #tpu.memory_space<vmem>>, vector<32x64xf32>
    %cst_57 = arith.constant dense<0.000000e+00> : vector<8x64xf32>
    %111 = tpu.matmul %109, %110, %cst_57 {dimension_numbers = #tpu.dot_dimension_numbers<[1], [0], [0], [1], [0, 0, 1, 1], [], []>} : vector<8x32xf32>, vector<32x64xf32>, vector<8x64xf32> -> vector<8x64xf32>
    %cst_58 = arith.constant 0.000000e+00 : f32
    %112 = vector.broadcast %cst_58 : f32 to vector<8x64xf32>
    %113 = arith.maximumf %111, %112 : vector<8x64xf32>
    %c0_59 = arith.constant 0 : index
    %c0_60 = arith.constant 0 : index
    %114 = vector.load %arg10[%c0_59, %c0_60] : memref<64x32xf32, #tpu.memory_space<vmem>>, vector<64x32xf32>
    %cst_61 = arith.constant dense<0.000000e+00> : vector<8x32xf32>
    %115 = tpu.matmul %113, %114, %cst_61 {dimension_numbers = #tpu.dot_dimension_numbers<[1], [0], [0], [1], [0, 0, 1, 1], [], []>} : vector<8x64xf32>, vector<64x32xf32>, vector<8x32xf32> -> vector<8x32xf32>
    %116 = arith.addf %115, %109 : vector<8x32xf32>
    %c0_62 = arith.constant 0 : index
    %c0_63 = arith.constant 0 : index
    %117 = vector.load %arg11[%c0_62, %c0_63] : memref<1x32xf32, #tpu.memory_space<vmem>>, vector<1x32xf32>
    %c0_64 = arith.constant 0 : index
    %c0_65 = arith.constant 0 : index
    %118 = vector.load %arg12[%c0_64, %c0_65] : memref<1x32xf32, #tpu.memory_space<vmem>>, vector<1x32xf32>
    %cst_66 = arith.constant dense<0.000000e+00> : vector<8xf32>
    %119 = vector.multi_reduction <add>, %116, %cst_66 [1] : vector<8x32xf32> to vector<8xf32>
    %120 = vector.shape_cast %119 : vector<8xf32> to vector<8x1xf32>
    %cst_67 = arith.constant 3.200000e+01 : f32
    %121 = vector.broadcast %cst_67 : f32 to vector<8x1xf32>
    %122 = arith.divf %120, %121 : vector<8x1xf32>
    %123 = vector.broadcast %122 : vector<8x1xf32> to vector<8x32xf32>
    %124 = arith.subf %116, %123 : vector<8x32xf32>
    %125 = arith.mulf %124, %124 : vector<8x32xf32>
    %cst_68 = arith.constant dense<0.000000e+00> : vector<8xf32>
    %126 = vector.multi_reduction <add>, %125, %cst_68 [1] : vector<8x32xf32> to vector<8xf32>
    %127 = vector.shape_cast %126 : vector<8xf32> to vector<8x1xf32>
    %cst_69 = arith.constant 3.200000e+01 : f32
    %128 = vector.broadcast %cst_69 : f32 to vector<8x1xf32>
    %129 = arith.divf %127, %128 : vector<8x1xf32>
    %cst_70 = arith.constant 9.99999974E-6 : f32
    %130 = vector.broadcast %cst_70 : f32 to vector<8x1xf32>
    %131 = arith.addf %129, %130 : vector<8x1xf32>
    %132 = math.rsqrt %131 : vector<8x1xf32>
    %133 = vector.broadcast %132 : vector<8x1xf32> to vector<8x32xf32>
    %134 = arith.mulf %124, %133 : vector<8x32xf32>
    %135 = vector.broadcast %117 : vector<1x32xf32> to vector<8x32xf32>
    %136 = arith.mulf %134, %135 : vector<8x32xf32>
    %137 = vector.broadcast %118 : vector<1x32xf32> to vector<8x32xf32>
    %138 = arith.addf %136, %137 : vector<8x32xf32>
    %c0_71 = arith.constant 0 : index
    %c0_72 = arith.constant 0 : index
    %c0_73 = arith.constant 0 : index
    %139 = vector.load %arg13[%c0_71, %c0_72, %c0_73] : memref<1x8x32xf32, #tpu.memory_space<vmem>>, vector<1x8x32xf32>
    %140 = vector.shape_cast %139 : vector<1x8x32xf32> to vector<8x32xf32>
    %141 = vector.shape_cast %138 : vector<8x32xf32> to vector<1x8x32xf32>
    tpu.vector_store %arg13[%c0_71, %c0_72, %c0_73], %141 {strides = array<i32>} : memref<1x8x32xf32, #tpu.memory_space<vmem>>, vector<1x8x32xf32>,
    return
  }
  func.func @transform_0(%arg0: i32) -> (i32, i32, i32) {
    %c0_i32 = arith.constant 0 : i32
    %c0_i32_0 = arith.constant 0 : i32
    %c0_i32_1 = arith.constant 0 : i32
    return %arg0, %c0_i32, %c0_i32_0 : i32, i32, i32
  }
  func.func @transform_1(%arg0: i32) -> (i32, i32, i32) {
    %c0_i32 = arith.constant 0 : i32
    %c0_i32_0 = arith.constant 0 : i32
    %c0_i32_1 = arith.constant 0 : i32
    return %arg0, %c0_i32, %c0_i32_0 : i32, i32, i32
  }
  func.func @transform_2(%arg0: i32) -> (i32, i32) {
    %c0_i32 = arith.constant 0 : i32
    %c0_i32_0 = arith.constant 0 : i32
    %c0_i32_1 = arith.constant 0 : i32
    return %c0_i32, %c0_i32_0 : i32, i32
  }
  func.func @transform_3(%arg0: i32) -> (i32, i32) {
    %c0_i32 = arith.constant 0 : i32
    %c0_i32_0 = arith.constant 0 : i32
    %c0_i32_1 = arith.constant 0 : i32
    return %c0_i32, %c0_i32_0 : i32, i32
  }
  func.func @transform_4(%arg0: i32) -> (i32, i32) {
    %c0_i32 = arith.constant 0 : i32
    %c0_i32_0 = arith.constant 0 : i32
    %c0_i32_1 = arith.constant 0 : i32
    return %c0_i32, %c0_i32_0 : i32, i32
  }
  func.func @transform_5(%arg0: i32) -> (i32, i32) {
    %c0_i32 = arith.constant 0 : i32
    %c0_i32_0 = arith.constant 0 : i32
    %c0_i32_1 = arith.constant 0 : i32
    return %c0_i32, %c0_i32_0 : i32, i32
  }
  func.func @transform_6(%arg0: i32) -> (i32, i32) {
    %c0_i32 = arith.constant 0 : i32
    %c0_i32_0 = arith.constant 0 : i32
    %c0_i32_1 = arith.constant 0 : i32
    return %c0_i32, %c0_i32_0 : i32, i32
  }
  func.func @transform_7(%arg0: i32) -> (i32, i32) {
    %c0_i32 = arith.constant 0 : i32
    %c0_i32_0 = arith.constant 0 : i32
    %c0_i32_1 = arith.constant 0 : i32
    return %c0_i32, %c0_i32_0 : i32, i32
  }
  func.func @transform_8(%arg0: i32) -> (i32, i32) {
    %c0_i32 = arith.constant 0 : i32
    %c0_i32_0 = arith.constant 0 : i32
    %c0_i32_1 = arith.constant 0 : i32
    return %c0_i32, %c0_i32_0 : i32, i32
  }
  func.func @transform_9(%arg0: i32) -> (i32, i32) {
    %c0_i32 = arith.constant 0 : i32
    %c0_i32_0 = arith.constant 0 : i32
    %c0_i32_1 = arith.constant 0 : i32
    return %c0_i32, %c0_i32_0 : i32, i32
  }
  func.func @transform_10(%arg0: i32) -> (i32, i32) {
    %c0_i32 = arith.constant 0 : i32
    %c0_i32_0 = arith.constant 0 : i32
    %c0_i32_1 = arith.constant 0 : i32
    return %c0_i32, %c0_i32_0 : i32, i32
  }
  func.func @transform_11(%arg0: i32) -> (i32, i32) {
    %c0_i32 = arith.constant 0 : i32
    %c0_i32_0 = arith.constant 0 : i32
    %c0_i32_1 = arith.constant 0 : i32
    return %c0_i32, %c0_i32_0 : i32, i32
  }
  func.func @transform_12(%arg0: i32) -> (i32, i32, i32) {
    %c0_i32 = arith.constant 0 : i32
    %c0_i32_0 = arith.constant 0 : i32
    %c0_i32_1 = arith.constant 0 : i32
    return %arg0, %c0_i32, %c0_i32_0 : i32, i32, i32
  }
  func.func @transform_13(%arg0: i32) -> (i32, i32, i32, i32) {
    %c0_i32 = arith.constant 0 : i32
    %c0_i32_0 = arith.constant 0 : i32
    %c0_i32_1 = arith.constant 0 : i32
    %c0_i32_2 = arith.constant 0 : i32
    return %arg0, %c0_i32, %c0_i32_0, %c0_i32_1 : i32, i32, i32, i32
  }
}

</mosaic_0001>

<bundles_post_ra>
// kernel: tpu_custom_call.1
= control target key start
LH: loop header
LB: loop body
LE: loop exit
PB: predicated region body
PF: predicated region fallthrough
CT: control target
= control target key end

     0   :  { %s2698_s0 = inlined_call_operand.vmem [shape: f32[2,8,32], index: 0, kind: input, shape index: {}]   ;;  %s2699_s1 = inlined_call_operand.vmem [shape: f32[2,8,32], index: 1, kind: input, shape index: {}]   ;;  %s2700_s2 = inlined_call_operand.vmem [shape: f32[32,64], index: 2, kind: input, shape index: {}]   ;;  %s2701_s3 = inlined_call_operand.vmem [shape: f32[32,64], index: 3, kind: input, shape index: {}]   ;;  %s2702_s4 = inlined_call_operand.vmem [shape: f32[32,64], index: 4, kind: input, shape index: {}]   ;;  %s2703_s5 = inlined_call_operand.vmem [shape: f32[64,32], index: 5, kind: input, shape index: {}]   ;;  %s2704_s6 = inlined_call_operand.vmem [shape: f32[1,32], index: 6, kind: input, shape index: {}]   ;;  %s2705_s7 = inlined_call_operand.vmem [shape: f32[1,32], index: 7, kind: input, shape index: {}]   ;;  %s2706_s8 = inlined_call_operand.vmem [shape: f32[32,64], index: 8, kind: input, shape index: {}]   ;;  %s2707_s9 = inlined_call_operand.vmem [shape: f32[64,32], index: 9, kind: input, shape index: {}]   ;;  %s2708_s10 = inlined_call_operand.vmem [shape: f32[1,32], index: 10, kind: input, shape index: {}]   ;;  %s2709_s11 = inlined_call_operand.vmem [shape: f32[1,32], index: 11, kind: input, shape index: {}]   ;;  %s2710_s12 = inlined_call_operand.hbm [shape: f32[2,8,32], index: 12, kind: output, shape index: {0}]   ;;  %s2711_s13 = inlined_call_operand.hbm [shape: f32[2,4,8,8], index: 13, kind: output, shape index: {1}]  }
   0x1   :  { %2713 = sst [smem:[#allocation10_spill]] %s2698_s0 }
   0x2   :  { %2714 = sst [smem:[#allocation11_spill]] %s2700_s2 }
   0x3   :  { %2715 = sst [smem:[#allocation12_spill]] %s2701_s3 }
   0x4   :  { %19 = vsyncpa [#allocation3], 0 }
   0x5   :  { %21 = vsyncpa [#allocation3 + $0x1], 0 }
   0x6   :  { %22 = vsyncpa [#allocation5], 0 }
   0x7   :  { %24 = vsyncpa [#allocation5 + $0x1], 0  ;;  %s2335_s25 = smov 0   ;;  %s2337_s26 = smov 0  }
   0x8   :  { %s2339_s27 = smov 0   ;;  %s2341_s28 = smov 0  }
   0x9 LB: > { %2716 = sst [smem:[#allocation8_spill]] %s2246_s27  ;;  %s2356_s29 = sadd.s32 4294967295, %s2250_s28   ;;  %s2250_s28 = sphi %s2341_s28, %s2727_s28   ;;  %s2246_s27 = sphi %s2339_s27, %s2724_s27   ;;  %s2242_s26 = sphi %s2337_s26, %s2726_s26   ;;  %s2238_s25 = sphi %s2335_s25, %s2725_s25  }
   0xa   : > { %s1816_s30 = sadd.s32 4294967294, %s2250_s28   ;;  %s2360_s14 = sadd.s32 1, %s2250_s28  }
   0xb   : > { %s299_s15 = sadd.s32 1, %s2246_s27  ;;  %s296_s16 = ssub.s32 %s2250_s28, %s2360_s14 }
   0xc   : > { %p309_p0 = scmp.ne.s32.totalorder %s2246_s27, %s2242_s26  ;;  %p297_p1 = scmp.eq.s32.totalorder %s296_s16, 0 }
   0xd   : > { %p310_p2 = scmp.eq.s32.totalorder %s2356_s29, 1  ;;  %p315_p3 = scmp.ne.s32.totalorder %s2242_s26, %s2238_s25 }
   0xe   : > { %p316_p4 = scmp.eq.s32.totalorder %s1816_s30, 1  ;;  %p1819_p7 = scmp.ge.s32.totalorder %s2250_s28, 1 }
   0xf   : > { %s2371_s17 = scalar_select %p297_p1, %s2246_s27, %s299_s15  }
  0x10   : > { %p2373_p5 = por %p310_p2, %p309_p0  ;;  %p2377_p6 = por %p316_p4, %p315_p3 }
  0x11   : > { %2717 = sst [smem:[#allocation9_spill]] %s2371_s17  ;;  %p404_p8 = scmp.lt.s32.totalorder %s2250_s28, 3 }
  0x13   : > { %p405_p9 = pnand %p1819_p7, %p404_p8 }
  0x14   : > { %s2720_s3 = sld [smem:[#allocation12_spill]] (!%p405_p9)  ;;  %s2721_s2 = sld [smem:[#allocation11_spill]] (!%p405_p9)  ;;  %v2252_v3 = vmov (!%p405_p9), 0.0|0.0   ;;  %vm2253_vm0 = vmmov (!%p405_p9), 0   ;;  %v2254_v11 = vmov (!%p405_p9), 0.0   ;;  %v622_v14 = vld [vmem:[%s2702_s4] sm:$0xff] (!%p405_p9) }
  0x15   : > { %408 = sbr.rel (%p405_p9) target bundleno = 2512 (0x9d0), region = 68  ;;  %2039 = vmatprep.subr.bf16.mxu1 (!%p405_p9), %v2252_v3  ;;  %2033 = vmatprep.subr.bf16.mxu0 (!%p405_p9), %v2252_v3  ;;  %p456_p10 = scmp.lt.s32.totalorder (!%p405_p9), %s2356_s29, 1  ;;  %v623_v15 = vld [vmem:[%s2702_s4 + $0x8] sm:$0xff] (!%p405_p9)  ;;  %vm470_vm1 = vcmask (!%p405_p9), 261120   ;;  %v624_v19 = vld [vmem:[%s2702_s4 + $0x10] sm:$0xff] (!%p405_p9)  ;;  %v625_v20 = vld [vmem:[%s2702_s4 + $0x18] sm:$0xff] (!%p405_p9) }
  0x16   : > { %1930 = vmatprep.mubr.msk.f32.mxu1 (!%p405_p9), %vm2253_vm0, %v2254_v11  ;;  %1919 = vmatprep.mubr.msk.f32.mxu0 (!%p405_p9), %vm2253_vm0, %v2254_v11  ;;  %s2722_s0 = sld [smem:[#allocation10_spill]] (!%p405_p9)  ;;  %v2046_v18 = vpack.c.bf16 (!%p405_p9), %v623_v15, %v622_v14  ;;  %v2049_v21 = vpack.c.bf16 (!%p405_p9), %v625_v20, %v624_v19  ;;  %vm696_vm2 = vcmask (!%p405_p9), 130048   ;;  %vm773_vm3 = vcmask (!%p405_p9), 64512   ;;  %s2496_s21 = sand.u32 (!%p405_p9), 1, %s2242_s26  }
  0x17   : > { %s1821_s22 = sshll.u32 (!%p405_p9), %s2496_s21, 5  ;;  %vm1375_vm4 = vcmask (!%p405_p9), 392192   ;;  %vm1385_vm5 = vcmask (!%p405_p9), 523264   ;;  %s2261_s17 = smov (!%p405_p9), [#allocation4]  }
  0x18   : > { %s2500_s23 = scalar_lea.vmem (!%p405_p9), [#allocation4], %s1821_s22  ;;  %s2160_s20 = sshll.u32 (!%p405_p9), %s2261_s17, 4  ;;  %s2161_s20 = int_to_ptr.vmem [resolvable:$false] %s2160_s20 }
  0x1a   : > { %v545_v0 = vld [vmem:[%s2720_s3] sm:$0xff] (!%p405_p9)  ;;  %v546_v1 = vld [vmem:[%s2720_s3 + $0x8] sm:$0xff] (!%p405_p9)  ;;  %v547_v6 = vld [vmem:[%s2720_s3 + $0x10] sm:$0xff] (!%p405_p9) }
  0x1b   : > { %v466_v2 = vld [vmem:[%s2721_s2] sm:$0xff] (!%p405_p9)  ;;  %v2040_v4 = vpack.c.bf16 (!%p405_p9), %v546_v1, %v545_v0  ;;  %v467_v5 = vld [vmem:[%s2721_s2 + $0x8] sm:$0xff] (!%p405_p9)  ;;  %v548_v7 = vld [vmem:[%s2720_s3 + $0x18] sm:$0xff] (!%p405_p9) }
  0x1c   : > { %v2034_v8 = vpack.c.bf16 %v467_v5, %v466_v2  ;;  %v468_v9 = vld [vmem:[%s2721_s2 + $0x10] sm:$0xff]  ;;  %v469_v10 = vld [vmem:[%s2721_s2 + $0x18] sm:$0xff]  ;;  %v2043_v12 = vpack.c.bf16 %v548_v7, %v547_v6  ;;  %s457_s15 = scalar_select %p456_p10, %s2356_s29, 1 }
  0x1d   : > { %2041 = vmatpush3.bf16.msra.mxu1 %v2040_v4  ;;  %v2037_v13 = vpack.c.bf16 %v469_v10, %v468_v9  ;;  %s2255_s2 = smov 96  }
  0x1e   : > { %2035 = vmatpush3.bf16.msra.mxu0 %v2034_v8  ;;  %2042 = vmatprep.subr.bf16.mxu1 %v2252_v3  ;;  %s1822_s16 = sshll.u32 %s457_s15, 3  ;;  %s1684_s15 = scalar_lea.sflag [#allocation5], %s2496_s21 }
  0x1f   : > { %2036 = vmatprep.subr.bf16.mxu0 %v2252_v3  ;;  %s463_s24 = scalar_lea.vmem %s2699_s1, %s1822_s16  ;;  %s459_s3 = scalar_lea.vmem %s2722_s0, %s1822_s16 }
  0x20   : > { %v465_v16 = vld [vmem:[%s463_s24] sm:$0xff]  ;;  %s2257_s16 = smov 80  }
  0x21   : > { %2044 = vmatpush3.bf16.msra.mxu1 %v2043_v12  ;;  %v2429_v17 = vld [vmem:[%s459_s3] sm:$0xff]  ;;  %s2256_s3 = smov 112  }
  0x22   : > { %2038 = vmatpush3.bf16.msra.mxu0 %v2037_v13  ;;  %1949 = vmatprep.subr.mxu1 %v2254_v11 }
  0x23   : > { %2045 = vmatprep.subr.bf16.mxu0 %v2252_v3 }
  0x24   : > { %1931 = vmatmul.mubr.msk.f32.vlgmr.msra.gmra.mrb[0].mxu1 %vm470_vm1, %v465_v16 }
  0x25   : > { %1920 = vmatmul.mubr.msk.f32.vlgmr.msra.gmra.mrb[0].mxu0 %vm470_vm1, %v2429_v17  ;;  %1951 = vmatprep.mubr.msk.f32.mxu1 %vm2253_vm0, %v2254_v11 }
  0x26   : > { %2047 = vmatpush3.bf16.msra.mxu0 %v2046_v18  ;;  %1941 = vmatprep.mubr.msk.f32.mxu0 %vm2253_vm0, %v2254_v11 }
  0x27   : > { %2048 = vmatprep.subr.bf16.mxu0 %v2252_v3 }
  0x2a   : > { %2050 = vmatpush3.bf16.msra.mxu0 %v2049_v21  ;;  %v1377_v21 = vld [vmem:[%s2703_s5] sm:$0xff] }
  0x2b   : > { %1944 = vmatprep.subr.mxu0 %v2254_v11 }
  0x2d   : > { %1942 = vmatmul.mubr.msk.f32.vlgmr.msra.gmra.mrb[2].mxu0 %vm470_vm1, %v465_v16 }
  0x2e   : > { %1946 = vmatprep.mubr.msk.f32.mxu0 %vm2253_vm0, %v2254_v11 }
  0xf7   : > { %v618_v22 = vpop.f32.mrb[0].mxu1 }
  0xf8   : > { %1029 = vrot.lane.b32.xlu1 %v618_v22, %s2255_s2  ;;  %861 = vrot.lane.b32.xlu0 %v618_v22, %s2256_s3  ;;  %v540_v23 = vpop.f32.mrb[0].mxu0  ;;  %v1932_v24 = vpop.f32.mrb[1].mxu1 }
  0xf9   : > { %v544_v25 = vmul.f32 0.17677669, %v540_v23  ;;  %1945 = vmatpush3.xpose.msk.msra.mxu0 %vm696_vm2, %v618_v22  ;;  %v1921_v26 = vpop.f32.mrb[1].mxu0  ;;  %v1379_v23 = vld [vmem:[%s2703_s5 + $0x10] sm:$0xff] }
  0xfa   : > { %1954 = vmatprep.subr.mxu0 %v2254_v11 }
  0xfc   : > { %1947 = vmatmul.mubr.msk.f32.vlgmr.msra.gmra.mrb[4].mxu0 %vm696_vm2, %v544_v25  ;;  %1027 = vrot.lane.b32.xlu1 %v544_v25, %s2255_s2 }
  0xfd   : > { %859 = vrot.lane.b32.xlu0 %v544_v25, %s2256_s3  ;;  %1956 = vmatprep.mubr.msk.f32.mxu0 %vm2253_vm0, %v2254_v11 }
 0x100   : > { %1194 = vrot.lane.b32.xlu1 %v544_v25, %s2257_s16  ;;  %v2461_v27 = vpop.f32.mrb[2].mxu0  ;;  %v1380_v25 = vld [vmem:[%s2703_s5 + $0x18] sm:$0xff] }
 0x101   : > { %1196 = vrot.lane.b32.xlu0 %v618_v22, %s2257_s16  ;;  %v1943_v28 = vpop.f32.mrb[3].mxu0  ;;  %1950 = vmatpush3.msra.mxu1 %v2461_v27  ;;  %v1378_v22 = vld [vmem:[%s2703_s5 + $0x8] sm:$0xff]  ;;  %v2055_v26 = vpack.c.bf16 %v1380_v25, %v1379_v23 }
 0x102   : > { %1959 = vmatprep.subr.mxu1 %v2254_v11  ;;  %v2052_v24 = vpack.c.bf16 %v1378_v22, %v1377_v21 }
 0x16a   : > { %v862_v29 = vpop.permute.xlu0 %861  ;;  %v1030_v30 = vpop.permute.xlu1 %1029 }
 0x16b   : > { %1955 = vmatpush3.xpose.msk.msra.mxu0 %vm696_vm2, %v862_v29  ;;  %v1381_v29 = vld [vmem:[%s2703_s5 + $0x20] sm:$0xff] }
 0x16c   : > { %1964 = vmatprep.subr.mxu0 %v2254_v11 }
 0x16e   : > { %v1028_v32 = vpop.permute.xlu1 %1027 }
 0x16f   : > { %v860_v31 = vpop.permute.xlu0 %859 }
 0x170   : > { %1957 = vmatmul.mubr.msk.f32.vlgmr.msra.gmra.mrb[6].mxu0 %vm696_vm2, %v860_v31 }
 0x171   : > { %1965 = vmatpush3.xpose.msk.msra.mxu0 %vm696_vm2, %v1030_v30  ;;  %1966 = vmatprep.mubr.msk.f32.mxu0 %vm2253_vm0, %v2254_v11  ;;  %v1382_v30 = vld [vmem:[%s2703_s5 + $0x28] sm:$0xff] }
 0x172   : > { %1974 = vmatprep.subr.mxu0 %v2254_v11  ;;  %v1195_v34 = vpop.permute.xlu1 %1194  ;;  %v2058_v31 = vpack.c.bf16 %v1382_v30, %v1381_v29 }
 0x173   : > { %v1197_v33 = vpop.permute.xlu0 %1196 }
 0x174   : > { %1967 = vmatmul.mubr.msk.f32.vlgmr.msra.gmra.mrb[8].mxu0 %vm696_vm2, %v1028_v32  ;;  %v1383_v32 = vld [vmem:[%s2703_s5 + $0x30] sm:$0xff] }
 0x175   : > { %1975 = vmatpush3.xpose.msk.msra.mxu0 %vm696_vm2, %v1197_v33  ;;  %1976 = vmatprep.mubr.msk.f32.mxu0 %vm2253_vm0, %v2254_v11  ;;  %v1384_v33 = vld [vmem:[%s2703_s5 + $0x38] sm:$0xff] }
 0x176   : > { %2051 = vmatprep.subr.bf16.mxu0 %v2252_v3 }
 0x178   : > { %1977 = vmatmul.mubr.msk.f32.vlgmr.msra.gmra.mrb[10].mxu0 %vm696_vm2, %v1195_v34  ;;  %v2061_v34 = vpack.c.bf16 %v1384_v33, %v1383_v32 }
 0x179   : > { %2000 = vmatprep.mubr.msk.f32.mxu0 %vm2253_vm0, %v2254_v11  ;;  %2053 = vmatpush3.bf16.msra.mxu0 %v2052_v24 }
 0x17a   : > { %2054 = vmatprep.subr.bf16.mxu0 %v2252_v3 }
 0x17d   : > { %2056 = vmatpush3.bf16.msra.mxu0 %v2055_v26 }
 0x17e   : > { %2057 = vmatprep.subr.bf16.mxu0 %v2252_v3 }
 0x181   : > { %2059 = vmatpush3.bf16.msra.mxu0 %v2058_v31 }
 0x182   : > { %2060 = vmatprep.subr.bf16.mxu0 %v2252_v3 }
 0x185   : > { %2062 = vmatpush3.bf16.msra.mxu0 %v2061_v34 }
 0x1cf   : > { %v769_v35 = vpop.f32.mrb[4].mxu0 }
 0x1d0   : > { %v1948_v36 = vpop.f32.mrb[5].mxu0  ;;  %v774_v37 = vsel %vm773_vm3, %v769_v35, -inf }
 0x1d1   : > { %775 = vmax.xlane.f32.xlu0 %v774_v37 }
 0x243   : > { %v933_v38 = vpop.f32.mrb[6].mxu0 }
 0x244   : > { %v1958_v39 = vpop.f32.mrb[7].mxu0  ;;  %v937_v40 = vsel %vm773_vm3, %v933_v38, -inf }
 0x245   : > { %938 = vmax.xlane.f32.xlu1 %v937_v40 }
 0x247   : > { %v1101_v41 = vpop.f32.mrb[8].mxu0 }
 0x248   : > { %v1968_v42 = vpop.f32.mrb[9].mxu0  ;;  %v1105_v43 = vsel %vm773_vm3, %v1101_v41, -inf }
 0x249   : > { %1106 = vmax.xlane.f32.xlu0 %v1105_v43 }
 0x24b   : > { %v1268_v44 = vpop.f32.mrb[10].mxu0 }
 0x24c   : > { %v1978_v45 = vpop.f32.mrb[11].mxu0  ;;  %v1272_v46 = vsel %vm773_vm3, %v1268_v44, -inf }
 0x24d   : > { %1273 = vmax.xlane.f32.xlu0 %v1272_v46 }
 0x256   : > { %951 = vrot.lane.b32.xlu1 %v2461_v27, %s2256_s3  ;;  %s2259_s3 = smov 32  }
 0x25e   : > { %v776_v47 = vpop.xlane.xlu0 %775 }
 0x25f   : > { %v777_v48 = vsub.f32 %v769_v35, %v776_v47 }
 0x261   : > { %v778_v49 = vmul.f32 1.442695, %v777_v48 }
 0x263   : > { %2136 = vpow2.f32 %v778_v49 }
 0x26d   : > { %v2137_v50 = vpop.eup %2136 }
 0x26e   : > { %v780_v51 = vsel %vm773_vm3, %v2137_v50, 0.0 }
 0x27a   : > { %781 = vadd.xlane.f32.xlu1 %v780_v51 }
 0x2d2   : > { %v939_v52 = vpop.xlane.xlu1 %938 }
 0x2d3   : > { %v940_v53 = vsub.f32 %v933_v38, %v939_v52 }
 0x2d5   : > { %v941_v54 = vmul.f32 1.442695, %v940_v53 }
 0x2d6   : > { %v1107_v55 = vpop.xlane.xlu0 %1106  ;;  %v952_v4 = vpop.permute.xlu1 %951 }
 0x2d7   : > { %2138 = vpow2.f32 %v941_v54  ;;  %v1108_v56 = vsub.f32 %v1101_v41, %v1107_v55 }
 0x2d9   : > { %v1109_v57 = vmul.f32 1.442695, %v1108_v56  ;;  %v1489_v56 = vld [vmem:[%s2706_s8] sm:$0xff] }
 0x2da   : > { %v1274_v58 = vpop.xlane.xlu0 %1273 }
 0x2db   : > { %2140 = vpow2.f32 %v1109_v57  ;;  %v1275_v59 = vsub.f32 %v1268_v44, %v1274_v58  ;;  %v1490_v57 = vld [vmem:[%s2706_s8 + $0x8] sm:$0xff]  ;;  %v1491_v58 = vld [vmem:[%s2706_s8 + $0x10] sm:$0xff] }
 0x2dd   : > { %v1276_v60 = vmul.f32 1.442695, %v1275_v59  ;;  %v1492_v59 = vld [vmem:[%s2706_s8 + $0x18] sm:$0xff] }
 0x2df   : > { %2142 = vpow2.f32 %v1276_v60  ;;  %v2067_v60 = vpack.c.bf16 %v1492_v59, %v1491_v58 }
 0x2e1   : > { %v2139_v61 = vpop.eup %2138 }
 0x2e2   : > { %v943_v62 = vsel %vm773_vm3, %v2139_v61, 0.0 }
 0x2e3   : > { %944 = vadd.xlane.f32.xlu0 %v943_v62 }
 0x2e5   : > { %v2141_v63 = vpop.eup %2140 }
 0x2e6   : > { %v1111_v0 = vsel %vm773_vm3, %v2141_v63, 0.0 }
 0x2e7   : > { %1112 = vadd.xlane.f32.xlu1 %v1111_v0 }
 0x2e9   : > { %v2143_v1 = vpop.eup %2142 }
 0x2ea   : > { %v1278_v2 = vsel %vm773_vm3, %v2143_v1, 0.0 }
 0x2eb   : > { %1279 = vadd.xlane.f32.xlu0 %v1278_v2 }
 0x2f8   : > { %1285 = vrot.lane.b32.xlu1 %v2461_v27, %s2257_s16  ;;  %s2260_s16 = smov 48  }
 0x301   : > { %1118 = vrot.lane.b32.xlu0 %v2461_v27, %s2255_s2  ;;  %s2258_s2 = smov 16  }
 0x307   : > { %v782_v5 = vpop.xlane.xlu1 %781 }
 0x308   : > { %2144 = vrcp.f32 %v782_v5  ;;  %v1568_v5 = vld [vmem:[%s2707_s9 + $0x8] sm:$0xff] }
 0x312   : > { %v2145_v6 = vpop.eup %2144 }
 0x313   : > { %v784_v7 = vmul.f32 %v2145_v6, %v2137_v50  ;;  %v1844_v6 = vld [vmem:[%s2705_s7] ss:$0 sm:$0xff] }
 0x315   : > { %1952 = vmatmul.mubr.msk.f32.vlgmr.msra.gmra.mrb[2].mxu1 %vm773_vm3, %v784_v7  ;;  %785 = vst.msk [vmem:[%s2500_s23] sm:$0xff] %vm773_vm3, %v784_v7 }
 0x316   : > { %1960 = vmatpush3.msra.mxu1 %v952_v4  ;;  %1961 = vmatprep.mubr.msk.f32.mxu1 %vm2253_vm0, %v2254_v11  ;;  %v1567_v4 = vld [vmem:[%s2707_s9] sm:$0xff] }
 0x317   : > { %1969 = vmatprep.subr.mxu1 %v2254_v11 }
 0x370   : > { %v945_v8 = vpop.xlane.xlu0 %944 }
 0x371   : > { %2146 = vrcp.f32 %v945_v8  ;;  %v2070_v8 = vpack.c.bf16 %v1568_v5, %v1567_v4 }
 0x374   : > { %v1113_v9 = vpop.xlane.xlu1 %1112 }
 0x375   : > { %2148 = vrcp.f32 %v1113_v9 }
 0x378   : > { %v1280_v10 = vpop.xlane.xlu0 %1279  ;;  %v1286_v18 = vpop.permute.xlu1 %1285 }
 0x379   : > { %2150 = vrcp.f32 %v1280_v10  ;;  %v1569_v10 = vld [vmem:[%s2707_s9 + $0x10] sm:$0xff] }
 0x37b   : > { %v2147_v12 = vpop.eup %2146 }
 0x37c   : > { %v947_v13 = vmul.f32 %v2147_v12, %v2139_v61  ;;  %v1119_v14 = vpop.permute.xlu0 %1118  ;;  %v1570_v12 = vld [vmem:[%s2707_s9 + $0x18] sm:$0xff] }
 0x37e   : > { %1962 = vmatmul.mubr.msk.f32.vlgmr.msra.gmra.mrb[4].mxu1 %vm773_vm3, %v947_v13  ;;  %1832 = vst.msk [vmem:[%s2500_s23 + $0x8] sm:$0xff] %vm773_vm3, %v947_v13  ;;  %v2073_v13 = vpack.c.bf16 %v1570_v12, %v1569_v10 }
 0x37f   : > { %v2149_v15 = vpop.eup %2148  ;;  %1970 = vmatpush3.msra.mxu1 %v1119_v14  ;;  %1971 = vmatprep.mubr.msk.f32.mxu1 %vm2253_vm0, %v2254_v11  ;;  %v1571_v14 = vld [vmem:[%s2707_s9 + $0x20] sm:$0xff] }
 0x380   : > { %v1115_v16 = vmul.f32 %v2149_v15, %v2141_v63  ;;  %1979 = vmatprep.subr.mxu1 %v2254_v11  ;;  %v1572_v15 = vld [vmem:[%s2707_s9 + $0x28] sm:$0xff] }
 0x382   : > { %1972 = vmatmul.mubr.msk.f32.vlgmr.msra.gmra.mrb[6].mxu1 %vm773_vm3, %v1115_v16  ;;  %1836 = vst.msk [vmem:[%s2500_s23 + $0x10] sm:$0xff] %vm773_vm3, %v1115_v16  ;;  %v2076_v16 = vpack.c.bf16 %v1572_v15, %v1571_v14 }
 0x383   : > { %v2151_v19 = vpop.eup %2150  ;;  %1980 = vmatpush3.msra.mxu1 %v1286_v18  ;;  %1981 = vmatprep.mubr.msk.f32.mxu1 %vm2253_vm0, %v2254_v11  ;;  %v1574_v18 = vld [vmem:[%s2707_s9 + $0x38] sm:$0xff] }
 0x384   : > { %v1282_v20 = vmul.f32 %v2151_v19, %v2143_v1  ;;  %2063 = vmatprep.subr.bf16.mxu1 %v2252_v3  ;;  %v1843_v1 = vld [vmem:[%s2704_s6] ss:$0 sm:$0xff] }
 0x386   : > { %1982 = vmatmul.mubr.msk.f32.vlgmr.msra.gmra.mrb[8].mxu1 %vm773_vm3, %v1282_v20  ;;  %1840 = vst.msk [vmem:[%s2500_s23 + $0x18] sm:$0xff] %vm773_vm3, %v1282_v20 }
 0x387   : > { %2011 = vmatprep.mubr.msk.f32.mxu1 %vm2253_vm0, %v2254_v11 }
 0x3e8   : > { %v855_v27 = vpop.f32.mrb[2].mxu1 }
 0x3e9   : > { %v1953_v28 = vpop.f32.mrb[3].mxu1 }
 0x451   : > { %v1023_v35 = vpop.f32.mrb[4].mxu1 }
 0x452   : > { %1362 = vrot.lane.b32.xlu1 %v1023_v35, %s2258_s2  ;;  %v1963_v36 = vpop.f32.mrb[5].mxu1 }
 0x455   : > { %v1190_v37 = vpop.f32.mrb[6].mxu1 }
 0x456   : > { %1366 = vrot.lane.b32.xlu0 %v1190_v37, %s2259_s3  ;;  %v1973_v38 = vpop.f32.mrb[7].mxu1  ;;  %s1710_s3 = sshll.u32 %s2500_s23, 4  ;;  %s2162_s23 = scalar_lea.vmem %s2161_s20, 1024  ;;  %s2612_s3 = int_to_ptr.vmem [resolvable:$true] %s1710_s3 }
 0x457   : > { %s2156_s27 = scalar_lea.vmem %s2612_s3, 512  ;;  %p2163_p0 = scmp.lt.s32.totalorder %s2612_s3, %s2161_s20 }
 0x458   : > { %p2157_p11 = scmp.ne.s32.totalorder %s2612_s3, %s2156_s27  ;;  %p2164_p1 = scmp.lt.s32.totalorder %s2162_s23, %s2156_s27 }
 0x459   : > { %v1357_v39 = vpop.f32.mrb[8].mxu1 }
 0x45a   : > { %1370 = vrot.lane.b32.xlu1 %v1357_v39, %s2260_s16  ;;  %v1983_v40 = vpop.f32.mrb[9].mxu1  ;;  %s1856_s16 = sshll.u32 %s2356_s29, 9  ;;  %p2158_p12 = pnand %p2157_p11, %p2373_p5 }
 0x45b   : > { %s2617_s30 = scalar_lea.hbm %s2711_s13, %s1856_s16  ;;  %p2165_p2 = por %p2164_p1, %p2163_p0 }
 0x45c   : > { %p2159_p13 = pneg %p2158_p12 }
 0x45e   : > { %p2166_p3 = pnand %p2165_p2, %p2159_p13 }
 0x4c4   : > { %v1363_v41 = vpop.permute.xlu1 %1362 }
 0x4c5   : > { %v1373_v43 = vsel %vm696_vm2, %v855_v27, %v1363_v41 }
 0x4c8   : > { %v1367_v42 = vpop.permute.xlu0 %1366 }
 0x4c9   : > { %v1374_v44 = vsel %vm470_vm1, %v1373_v43, %v1367_v42 }
 0x4cc   : > { %v1371_v45 = vpop.permute.xlu1 %1370 }
 0x4cd   : > { %v1376_v46 = vsel %vm1375_vm4, %v1374_v44, %v1371_v45 }
 0x4ce   : > { %2001 = vmatmul.mubr.msk.f32.vlgmr.msra.gmra.mrb[12].mxu0 %vm1385_vm5, %v1376_v46 }
 0x5a1   : > { %v1455_v47 = vpop.f32.mrb[12].mxu0 }
 0x5a2   : > { %v1456_v48 = vadd.f32 %v1455_v47, %v2429_v17  ;;  %v2002_v49 = vpop.f32.mrb[13].mxu0  ;;  %v2064_v17 = vpack.c.bf16 %v1490_v57, %v1489_v56 }
 0x5a4   : > { %v1461_v50 = vsel %vm470_vm1, %v1456_v48, 0.0  ;;  %2065 = vmatpush3.bf16.msra.mxu1 %v2064_v17 }
 0x5a5   : > { %1462 = vadd.xlane.f32.xlu0 %v1461_v50  ;;  %2066 = vmatprep.subr.bf16.mxu1 %v2252_v3 }
 0x5a8   : > { %2068 = vmatpush3.bf16.msra.mxu1 %v2067_v60 }
 0x5a9   : > { %2069 = vmatprep.subr.bf16.mxu1 %v2252_v3 }
 0x632   : > { %v1463_v51 = vpop.xlane.xlu0 %1462 }
 0x633   : > { %v1465_v52 = vmul.f32 0.03125, %v1463_v51 }
 0x635   : > { %v1466_v53 = vsub.f32 %v1456_v48, %v1465_v52 }
 0x637   : > { %v1467_v54 = vmul.f32 %v1466_v53, %v1466_v53 }
 0x639   : > { %v1468_v55 = vsel %vm470_vm1, %v1467_v54, 0.0 }
 0x63a   : > { %1469 = vadd.xlane.f32.xlu1 %v1468_v55 }
 0x6c7   : > { %v1470_v61 = vpop.xlane.xlu1 %1469 }
 0x6c8   : > { %v1471_v62 = vmul.f32 0.03125, %v1470_v61 }
 0x6ca   : > { %v1472_v63 = vadd.f32 1e-05, %v1471_v62 }
 0x6cc   : > { %2152 = vrsqrt.f32 %v1472_v63 }
 0x6d6   : > { %v2153_v0 = vpop.eup %2152 }
 0x6d7   : > { %v1474_v2 = vmul.f32 %v2153_v0, %v1466_v53 }
 0x6d9   : > { %v1481_v7 = vmul.f32 %v1843_v1, %v1474_v2 }
 0x6db   : > { %v1488_v9 = vadd.f32 %v1844_v6, %v1481_v7 }
 0x6dd   : > { %2012 = vmatmul.mubr.msk.f32.vlgmr.msra.gmra.mrb[10].mxu1 %vm470_vm1, %v1488_v9 }
 0x6de   : > { %2071 = vmatpush3.bf16.msra.mxu1 %v2070_v8  ;;  %2030 = vmatprep.mubr.msk.f32.mxu1 %vm2253_vm0, %v2254_v11  ;;  %v1573_v11 = vld [vmem:[%s2707_s9 + $0x30] sm:$0xff] }
 0x6df   : > { %2072 = vmatprep.subr.bf16.mxu1 %v2252_v3  ;;  %v2079_v19 = vpack.c.bf16 %v1574_v18, %v1573_v11 }
 0x6e2   : > { %2074 = vmatpush3.bf16.msra.mxu1 %v2073_v13 }
 0x6e3   : > { %2075 = vmatprep.subr.bf16.mxu1 %v2252_v3 }
 0x6e6   : > { %2077 = vmatpush3.bf16.msra.mxu1 %v2076_v16 }
 0x6e7   : > { %2078 = vmatprep.subr.bf16.mxu1 %v2252_v3 }
 0x6ea   : > { %2080 = vmatpush3.bf16.msra.mxu1 %v2079_v19 }
 0x7b0   : > { %v1562_v20 = vpop.f32.mrb[10].mxu1 }
 0x7b1   : > { %v1566_v21 = vmax.f32 %v1562_v20, 0.0  ;;  %v2013_v22 = vpop.f32.mrb[11].mxu1 }
 0x7b3   : > { %2031 = vmatmul.mubr.msk.f32.vlgmr.msra.gmra.mrb[12].mxu1 %vm1385_vm5, %v1566_v21 }
 0x886   : > { %v1644_v23 = vpop.f32.mrb[12].mxu1 }
 0x887   : > { %v1645_v3 = vadd.f32 %v1644_v23, %v1488_v9  ;;  %v2032_v24 = vpop.f32.mrb[13].mxu1 }
 0x889   : > { %v1650_v25 = vsel %vm470_vm1, %v1645_v3, 0.0 }
 0x88a   : > { %1651 = vadd.xlane.f32.xlu0 %v1650_v25 }
 0x917   : > { %v1652_v26 = vpop.xlane.xlu0 %1651 }
 0x918   : > { %v1653_v27 = vmul.f32 0.03125, %v1652_v26 }
 0x91a   : > { %v1654_v28 = vsub.f32 %v1645_v3, %v1653_v27 }
 0x91c   : > { %v1655_v29 = vmul.f32 %v1654_v28, %v1654_v28 }
 0x91e   : > { %v1656_v30 = vsel %vm470_vm1, %v1655_v29, 0.0 }
 0x91f   : > { %1657 = vadd.xlane.f32.xlu0 %v1656_v30 }
 0x920   : > { %2169 = shalt.err (!%p2166_p3)
}
 0x921   : > { %s2170_s2 = scalar_lea.hbm %s2617_s30, 512  ;;  %s2174_s24 = scalar_lea.hbm %s2711_s13, 1024 }
 0x922   : > { %p2171_p4 = scmp.ne.s32.totalorder %s2617_s30, %s2170_s2  ;;  %p2175_p9 = scmp.lt.u32.totalorder %s2617_s30, %s2711_s13 }
 0x923   : > { %p2176_p10 = scmp.lt.u32.totalorder %s2174_s24, %s2170_s2  ;;  %p2178_p12 = scmp.lt.u32.totalorder %s2170_s2, %s2617_s30 }
 0x924   : > { %p2172_p7 = pnand %p2171_p4, %p2373_p5 }
 0x925   : > { %p2177_p11 = por %p2176_p10, %p2175_p9 }
 0x926   : > { %p2173_p8 = pneg %p2172_p7 }
 0x927   : > { %p2179_p13 = por %p2178_p12, %p2177_p11 }
 0x929   : > { %p2180_p0 = pnand %p2179_p13, %p2173_p8 }
 0x92b   : > { %2183 = shalt.err (!%p2180_p0)
}
 0x92c   : > { %s2262_s27 = smov 128   ;;  %s2263_s23 = smov 8   ;;  %v1847_v35 = vld [vmem:[%s2708_s10] ss:$0 sm:$0xff] }
 0x92d   : > { %2082 = dma.vmem_to_hbm [thread:$0]  (%p2373_p5), %s2612_s3, 512, %s2617_s30, %s1684_s15, %s2262_s27, %s2262_s27, %s2263_s23  }
 0x92e   : > { %s1820_s2 = sshll.u32 %s2496_s21, 3  ;;  %v1848_v37 = vld [vmem:[%s2709_s11] ss:$0 sm:$0xff]  ;;  %s1851_s20 = sshll.u32 %s2356_s29, 7 }
 0x92f   : > { %s448_s0 = scalar_lea.vmem [#allocation2], %s1820_s2  ;;  %s2654_s27 = scalar_lea.hbm %s2710_s12, %s1851_s20 }
 0x930   : > { %s1697_s3 = sshll.u32 %s448_s0, 4  ;;  %s1679_s23 = scalar_lea.sflag [#allocation3], %s2496_s21  ;;  %s2656_s3 = int_to_ptr.vmem [resolvable:$true] %s1697_s3 }
 0x931   : > { %s2184_s16 = scalar_lea.vmem %s2656_s3, 128  ;;  %s2264_s29 = smov [#allocation2]  }
 0x932   : > { %p2185_p1 = scmp.ne.s32.totalorder %s2656_s3, %s2184_s16  ;;  %s2188_s2 = sshll.u32 %s2264_s29, 4  ;;  %s2189_s2 = int_to_ptr.vmem [resolvable:$false] %s2188_s2 }
 0x933   : > { %s2190_s22 = scalar_lea.vmem %s2189_s2, 256  ;;  %p2191_p4 = scmp.lt.s32.totalorder %s2656_s3, %s2189_s2 }
 0x934   : > { %p2186_p2 = pnand %p2185_p1, %p2373_p5  ;;  %p2192_p7 = scmp.lt.s32.totalorder %s2190_s22, %s2184_s16 }
 0x936   : > { %p2187_p3 = pneg %p2186_p2  ;;  %p2193_p8 = por %p2192_p7, %p2191_p4 }
 0x938   : > { %p2194_p9 = pnand %p2193_p8, %p2187_p3 }
 0x9ac   : > { %v1658_v31 = vpop.xlane.xlu0 %1657 }
 0x9ad   : > { %v1659_v32 = vmul.f32 0.03125, %v1658_v31 }
 0x9af   : > { %v1660_v33 = vadd.f32 1e-05, %v1659_v32 }
 0x9b1   : > { %2154 = vrsqrt.f32 %v1660_v33 }
 0x9bb   : > { %v2155_v34 = vpop.eup %2154 }
 0x9bc   : > { %v1662_v36 = vmul.f32 %v2155_v34, %v1654_v28 }
 0x9be   : > { %v1669_v38 = vmul.f32 %v1847_v35, %v1662_v36 }
 0x9c0   : > { %v1676_v39 = vadd.f32 %v1848_v37, %v1669_v38 }
 0x9c2   : > { %1677 = vst.msk [vmem:[%s448_s0] sm:$0xff] %vm470_vm1, %v1676_v39 }
 0x9c3   : > { %2197 = shalt.err (!%p2194_p9)
}
 0x9c4   : > { %s2198_s0 = scalar_lea.hbm %s2654_s27, 128  ;;  %s2202_s17 = scalar_lea.hbm %s2710_s12, 256 }
 0x9c5   : > { %p2199_p10 = scmp.ne.s32.totalorder %s2654_s27, %s2198_s0  ;;  %p2203_p13 = scmp.lt.u32.totalorder %s2654_s27, %s2710_s12 }
 0x9c6   : > { %p2204_p0 = scmp.lt.u32.totalorder %s2202_s17, %s2198_s0  ;;  %p2206_p2 = scmp.lt.u32.totalorder %s2198_s0, %s2654_s27 }
 0x9c7   : > { %p2200_p11 = pnand %p2199_p10, %p2373_p5 }
 0x9c8   : > { %p2205_p1 = por %p2204_p0, %p2203_p13 }
 0x9c9   : > { %p2201_p12 = pneg %p2200_p11 }
 0x9ca   : > { %p2207_p3 = por %p2206_p2, %p2205_p1 }
 0x9cc   : > { %p2208_p4 = pnand %p2207_p3, %p2201_p12 }
 0x9ce   : > { %2211 = shalt.err (!%p2208_p4)
}
 0x9cf   : > { %2081 = dma.vmem_to_hbm [thread:$0]  (%p2373_p5), %s2656_s3, 128, %s2654_s27, %s1679_s23  }
 0x9d0 PF: > { %p2092_p7 = scmp.ge.s32.totalorder %s2250_s28, 2  ;;  %s1725_s15 = sand.u32 1, %s2238_s25  }
 0x9d1   : > { %s1726_s16 = scalar_lea.sflag [#allocation3], %s1725_s15 }
 0x9d2   : > { %p2086_p8 = pnand %p2092_p7, %p2377_p6 }
 0x9d4   : > { %2229 = dma.done.wait (!%p2086_p8), %s1726_s16, 128  }
 0x9d5   : > { %2231 = vsyncadd (!%p2086_p8), %s1726_s16, 4294967168  ;;  %s1735_s29 = scalar_lea.sflag [#allocation5], %s1725_s15 }
 0x9d6   : > { %2233 = dma.done.wait (!%p2086_p8), %s1735_s29, 512  }
 0x9d7   : > { %2235 = vsyncadd (!%p2086_p8), %s1735_s29, 4294966784  ;;  %s2723_s18 = sld [smem:[#allocation8_spill]]  ;;  %s2724_s27 = sld [smem:[#allocation9_spill]] }
 0x9d8   : > { %p27_p5 = scmp.ge.s32.totalorder %s2360_s14, 4   ;;  %s2725_s25 = smov %s2242_s26 }
 0x9d9   : > { %s2727_s28 = smov %s2360_s14 }
 0x9da   :  { %29 = sbr.rel (!%p27_p5) target bundleno = 9 (0x9), region = 126 }
 0x9dd   : > { %s2726_s26 = smov %s2723_s18 }
 0x9e1   :  { %1740 = vsyncpa [#allocation3], 1 }
 0x9e2   :  { %1742 = vsyncpa [#allocation3 + $0x1], 1 }
 0x9e3   :  { %1743 = vsyncpa [#allocation5], 1 }
 0x9e4   :  { %1745 = vsyncpa [#allocation5 + $0x1], 1 }

</bundles_post_ra>
